<compile_context>
chip_gen: v5e
topology: v5e:2x2
jax: 0.10.0
libtpu: 0.0.40
codegen_flags: <defaults>
</compile_context>

<pallas_src>
import math
import functools

import jax
import jax.numpy as jnp
from jax.experimental import pallas as pl
from jax.experimental.pallas import tpu as pltpu


def _prompt_cross_attn_kernel(
    img_ref,        # (Bblk, Sq, E)   query tokens
    prompt_ref,     # (Bblk, Skv, P)  raw prompt tokens
    wp_ref, bp_ref,     # prompt_proj: (P, E), (1, E)
    wq_ref, bq_ref,     # q projection: (E, E), (1, E)
    *rest,              # kv weights (fused or split), out_proj, out_ref, attn scratch
    num_heads, scale, fuse_kv, approx_recip,
):
    if fuse_kv:
        wkv_ref, bkv_ref, wo_ref, bo_ref, out_ref, attn_ref = rest
    else:
        wk_ref, bk_ref, wv_ref, bv_ref, wo_ref, bo_ref, out_ref, attn_ref = rest

    f32 = jnp.float32
    Bblk, Sq, E = img_ref.shape
    _, Skv, P = prompt_ref.shape
    hd = E // num_heads
    cdt = img_ref.dtype          # MXU operand dtype (bf16-native when inputs are bf16)

    rows_q = Bblk * Sq
    rows_kv = Bblk * Skv

    # ---- projections: large flattened matmuls, native-dtype operands, f32 accumulation
    img2d = img_ref[...].reshape(rows_q, E)
    prompt2d = prompt_ref[...].reshape(rows_kv, P)

    prompt_emb = jnp.dot(prompt2d, wp_ref[...], preferred_element_type=f32) + bp_ref[...]
    prompt_emb_c = prompt_emb.astype(cdt)

    q = jnp.dot(img2d, wq_ref[...], preferred_element_type=f32) + bq_ref[...]
    q = (q * scale).astype(cdt)                    # attention scale applied once, in f32

    if fuse_kv:
        kv = jnp.dot(prompt_emb_c, wkv_ref[...], preferred_element_type=f32) + bkv_ref[...]
        k = kv[:, :E].astype(cdt)                  # 128-aligned lane slice (E % 128 == 0)
        v = kv[:, E:].astype(cdt)
    else:
        k = (jnp.dot(prompt_emb_c, wk_ref[...], preferred_element_type=f32)
             + bk_ref[...]).astype(cdt)
        v = (jnp.dot(prompt_emb_c, wv_ref[...], preferred_element_type=f32)
             + bv_ref[...]).astype(cdt)

    q3 = q.reshape(Bblk, Sq, E)
    k3 = k.reshape(Bblk, Skv, E)
    v3 = v.reshape(Bblk, Skv, E)

    # ---- per-head attention (short static loop, batched over the whole batch block);
    #      each head's output is written straight into the VMEM scratch slab.
    for h in range(num_heads):
        lo = h * hd
        qh = q3[:, :, lo:lo + hd]                  # (Bblk, Sq,  hd)
        kh = k3[:, :, lo:lo + hd]                  # (Bblk, Skv, hd)
        vh = v3[:, :, lo:lo + hd]                  # (Bblk, Skv, hd)

        s = jnp.einsum("bqd,bkd->bqk", qh, kh, preferred_element_type=f32)
        s = s - jnp.max(s, axis=-1, keepdims=True)
        p = jnp.exp(s)
        denom = jnp.sum(p, axis=-1, keepdims=True)
        if approx_recip:
            p = p * pl.reciprocal(denom, approx=True)   # EUP reciprocal (free slot)
        else:
            p = p / denom
        o = jnp.einsum("bqk,bkd->bqd", p.astype(cdt), vh, preferred_element_type=f32)
        attn_ref[:, lo:lo + hd] = o.reshape(rows_q, hd).astype(attn_ref.dtype)

    # ---- out projection + residual (residual add in f32)
    out = jnp.dot(attn_ref[...], wo_ref[...], preferred_element_type=f32) + bo_ref[...]
    out_ref[...] = (img2d.astype(f32) + out).reshape(Bblk, Sq, E).astype(out_ref.dtype)


def _vmem_estimate_bytes(block_b, Sq, Skv, E, P, io_bytes):
    """Conservative per-step VMEM footprint model (bytes)."""
    f32 = 4
    rows_q = block_b * Sq
    rows_kv = block_b * Skv
    # Pipelined (double-buffered) img / prompt / out blocks.
    io = 2 * (rows_q * E + rows_kv * P + rows_q * E) * io_bytes
    # Grid-invariant weights & biases (single-buffered).
    weights = (P * E + 4 * E * E + 5 * E) * io_bytes
    # Live in-kernel intermediates (f32 accumulators + compute-dtype copies + scratch).
    inter = (
        rows_kv * E * (f32 + io_bytes)            # prompt_emb (+ cast)
        + rows_q * E * (f32 + io_bytes)           # q (+ cast)
        + 2 * rows_kv * E * (f32 + io_bytes)      # k, v (+ casts)
        + 2 * block_b * Sq * Skv * f32            # one head's scores + probs
        + rows_q * E * io_bytes                   # attn scratch slab
        + rows_q * E * f32                        # out-proj accumulator / residual
    )
    return io + weights + inter


def _pick_block_b(B, Sq, Skv, E, P, io_bytes, budget_bytes):
    divisors = [d for d in range(1, B + 1) if B % d == 0]
    if B >= 2:
        # Keep >= 2 grid steps: shards the batch axis over v7x's two TensorCores and
        # keeps the DMA/compute pipeline overlapping.
        divisors = [d for d in divisors if B // d >= 2]
    fits = [d for d in divisors
            if _vmem_estimate_bytes(d, Sq, Skv, E, P, io_bytes) <= budget_bytes]
    if not fits:
        fits = [min(divisors)]
    even = [d for d in fits if (B // d) % 2 == 0]   # prefer even step counts (2 TCs)
    pool = even if even else fits
    return max(pool)


def _invariant_spec(shape):
    """BlockSpec for a grid-invariant operand: single-buffered if supported."""
    index_map = lambda b: (0,) * len(shape)
    buffered = getattr(pl, "Buffered", None)
    if buffered is not None:
        try:
            return pl.BlockSpec(shape, index_map, pipeline_mode=buffered(1))
        except TypeError:   # older JAX without pipeline_mode on BlockSpec
            pass
    return pl.BlockSpec(shape, index_map)


def prompt_cross_attention(img_tokens, prompt_tokens, params, num_heads, *,
                           block_b=None, approx_softmax_recip=True):
    """img_tokens: (B, Sq, E); prompt_tokens: (B, Skv, P); returns (B, Sq, E)."""
    B, Sq, E = img_tokens.shape
    _, Skv, P = prompt_tokens.shape
    if E % num_heads != 0:
        raise ValueError(f"embed_dim={E} must be divisible by num_heads={num_heads}")
    hd = E // num_heads
    scale = 1.0 / math.sqrt(hd)

    wp, bp, wq, bq, wk, bk, wv, bv, wo, bo = params

    # Fuse K and V into one (E, 2E) matmul only when the later kv split is a
    # 128-lane-aligned slice; otherwise two separate dots avoid relayout copies.
    fuse_kv = (E % 128 == 0)

    io_bytes = jnp.dtype(img_tokens.dtype).itemsize

    try:
        vmem_phys = int(pltpu.get_tpu_info().vmem_capacity_bytes)
    except Exception:
        vmem_phys = 64 * 1024 * 1024   # conservative fallback (v7x per-core VMEM)

    budget = int(0.40 * vmem_phys)

    if block_b is None:
        block_b = _pick_block_b(B, Sq, Skv, E, P, io_bytes, budget)
    else:
        block_b = max(1, min(block_b, B))
        while B % block_b != 0:
            block_b -= 1
    grid = (B // block_b,)

    est = _vmem_estimate_bytes(block_b, Sq, Skv, E, P, io_bytes)
    # TODO(synk): for embed dims whose weights alone exceed VMEM, add a grid axis that
    # blocks the projections over the feature dimension.
    vmem_limit = int(min(0.85 * vmem_phys, max(2 * est, 32 * 1024 * 1024)))

    block_in_specs = [
        pl.BlockSpec((block_b, Sq, E), lambda b: (b, 0, 0)),
        pl.BlockSpec((block_b, Skv, P), lambda b: (b, 0, 0)),
    ]
    weight_specs = [
        _invariant_spec((P, E)), _invariant_spec((1, E)),      # prompt_proj
        _invariant_spec((E, E)), _invariant_spec((1, E)),      # q proj
    ]
    if fuse_kv:
        wkv = jnp.concatenate([wk, wv], axis=1)                 # (E, 2E)
        bkv = jnp.concatenate([bk, bv], axis=1)                 # (1, 2E)
        kv_args = (wkv, bkv)
        weight_specs += [_invariant_spec((E, 2 * E)), _invariant_spec((1, 2 * E))]
    else:
        kv_args = (wk, bk, wv, bv)
        weight_specs += [_invariant_spec((E, E)), _invariant_spec((1, E)),
                         _invariant_spec((E, E)), _invariant_spec((1, E))]
    weight_specs += [_invariant_spec((E, E)), _invariant_spec((1, E))]  # out_proj

    grid_spec = pltpu.PrefetchScalarGridSpec(
        num_scalar_prefetch=0,
        grid=grid,
        in_specs=block_in_specs + weight_specs,
        out_specs=pl.BlockSpec((block_b, Sq, E), lambda b: (b, 0, 0)),
        scratch_shapes=[pltpu.VMEM((block_b * Sq, E), img_tokens.dtype)],
    )

    kernel = functools.partial(
        _prompt_cross_attn_kernel,
        num_heads=num_heads, scale=scale, fuse_kv=fuse_kv,
        approx_recip=approx_softmax_recip,
    )

    return pl.pallas_call(
        kernel,
        out_shape=jax.ShapeDtypeStruct((B, Sq, E), img_tokens.dtype),
        grid_spec=grid_spec,
        compiler_params=pltpu.CompilerParams(
            dimension_semantics=("parallel",),
            vmem_limit_bytes=vmem_limit,
        ),
    )(img_tokens, prompt_tokens, wp, bp, wq, bq, *kv_args, wo, bo)


def _reference(img_tokens, prompt_tokens, params, num_heads):
    """Pure-JAX reference mirroring nn.MultiheadAttention forward."""
    wp, bp, wq, bq, wk, bk, wv, bv, wo, bo = params
    B, Sq, E = img_tokens.shape
    hd = E // num_heads

    prompt_emb = prompt_tokens @ wp + bp
    q = img_tokens @ wq + bq
    k = prompt_emb @ wk + bk
    v = prompt_emb @ wv + bv

    def split(x):
        return x.reshape(B, -1, num_heads, hd).transpose(0, 2, 1, 3)

    qh, kh, vh = split(q), split(k), split(v)
    s = jnp.einsum("bhqd,bhkd->bhqk", qh, kh) / math.sqrt(hd)
    p = jax.nn.softmax(s, axis=-1)
    o = jnp.einsum("bhqk,bhkd->bhqd", p, vh)
    o = o.transpose(0, 2, 1, 3).reshape(B, Sq, E)
    return img_tokens + (o @ wo + bo)


def _make_params(key, embed_dim, prompt_dim):
    keys = jax.random.split(key, 6)
    scale = 0.05
    wp = scale * jax.random.normal(keys[0], (prompt_dim, embed_dim), jnp.float32)
    bp = scale * jax.random.normal(keys[1], (1, embed_dim), jnp.float32)
    in_proj = scale * jax.random.normal(keys[2], (3, embed_dim, embed_dim), jnp.float32)
    in_bias = scale * jax.random.normal(keys[3], (3, 1, embed_dim), jnp.float32)
    wq, wk, wv = in_proj[0], in_proj[1], in_proj[2]
    bq, bk, bv = in_bias[0], in_bias[1], in_bias[2]
    wo = scale * jax.random.normal(keys[4], (embed_dim, embed_dim), jnp.float32)
    bo = scale * jax.random.normal(keys[5], (1, embed_dim), jnp.float32)
    return (wp, bp, wq, bq, wk, bk, wv, bv, wo, bo)


if __name__ == "__main__":
    key = jax.random.PRNGKey(0)
    k_data, k_param, k_data2, k_param2 = jax.random.split(key, 4)

    # ---- test 1: small demo shapes (E=32 -> separate K/V dots), B=2 -> grid=(2,) ----
    B, Sq, Skv = 2, 16, 8
    embed_dim, num_heads, prompt_dim = 32, 4, 16
    kd = jax.random.split(k_data, 2)
    img_tokens = jax.random.normal(kd[0], (B, Sq, embed_dim), jnp.float32)
    prompt_tokens = jax.random.normal(kd[1], (B, Skv, prompt_dim), jnp.float32)
    params = _make_params(k_param, embed_dim, prompt_dim)

    ref = _reference(img_tokens, prompt_tokens, params, num_heads)
    out = prompt_cross_attention(img_tokens, prompt_tokens, params, num_heads)
    out = jax.block_until_ready(out)
    assert out.shape == (B, Sq, embed_dim)
    # Tolerance accounts for the approx EUP reciprocal in softmax normalization.
    assert jnp.allclose(out, ref, atol=2e-3, rtol=2e-3), "mismatch vs JAX reference (E=32)"

    # ---- test 2: E=128 exercises the fused (E, 2E) K|V matmul path and block_b>1 ----
    B2, Sq2, Skv2 = 4, 16, 8
    embed_dim2, num_heads2, prompt_dim2 = 128, 4, 32
    kd2 = jax.random.split(k_data2, 2)
    img2 = jax.random.normal(kd2[0], (B2, Sq2, embed_dim2), jnp.float32)
    prm2 = jax.random.normal(kd2[1], (B2, Skv2, prompt_dim2), jnp.float32)
    params2 = _make_params(k_param2, embed_dim2, prompt_dim2)

    ref2 = _reference(img2, prm2, params2, num_heads2)
    out2 = prompt_cross_attention(img2, prm2, params2, num_heads2)
    out2 = jax.block_until_ready(out2)
    assert out2.shape == (B2, Sq2, embed_dim2)
    assert jnp.allclose(out2, ref2, atol=2e-3, rtol=2e-3), "mismatch vs JAX reference (E=128)"

    print("KERNEL_OK")
</pallas_src>

<mosaic_0001>
module attributes {stable_mosaic.version = 11 : i64} {
  func.func @_prompt_cross_attn_kernel(%arg0: i32, %arg1: memref<1x16x32xf32, #tpu.memory_space<vmem>>, %arg2: memref<1x8x16xf32, #tpu.memory_space<vmem>>, %arg3: memref<16x32xf32, #tpu.memory_space<vmem>>, %arg4: memref<1x32xf32, #tpu.memory_space<vmem>>, %arg5: memref<32x32xf32, #tpu.memory_space<vmem>>, %arg6: memref<1x32xf32, #tpu.memory_space<vmem>>, %arg7: memref<32x32xf32, #tpu.memory_space<vmem>>, %arg8: memref<1x32xf32, #tpu.memory_space<vmem>>, %arg9: memref<32x32xf32, #tpu.memory_space<vmem>>, %arg10: memref<1x32xf32, #tpu.memory_space<vmem>>, %arg11: memref<32x32xf32, #tpu.memory_space<vmem>>, %arg12: memref<1x32xf32, #tpu.memory_space<vmem>>, %arg13: memref<1x16x32xf32, #tpu.memory_space<vmem>>, %arg14: memref<16x32xf32, #tpu.memory_space<vmem>>) attributes {dimension_semantics = [#tpu.dimension_semantics<parallel>], iteration_bounds = array<i64: 2>, scalar_prefetch = 0 : i64, scratch_operands = 1 : i64, tpu.core_type = #tpu.core_type<tc>, window_params = [{transform_indices = @transform_0, window_bounds = array<i64: 1, 16, 32>}, {transform_indices = @transform_1, window_bounds = array<i64: 1, 8, 16>}, {pipeline_mode = #tpu.pipeline_mode<synchronous>, transform_indices = @transform_2, window_bounds = array<i64: 16, 32>}, {pipeline_mode = #tpu.pipeline_mode<synchronous>, transform_indices = @transform_3, window_bounds = array<i64: 1, 32>}, {pipeline_mode = #tpu.pipeline_mode<synchronous>, transform_indices = @transform_4, window_bounds = array<i64: 32, 32>}, {pipeline_mode = #tpu.pipeline_mode<synchronous>, transform_indices = @transform_5, window_bounds = array<i64: 1, 32>}, {pipeline_mode = #tpu.pipeline_mode<synchronous>, transform_indices = @transform_6, window_bounds = array<i64: 32, 32>}, {pipeline_mode = #tpu.pipeline_mode<synchronous>, transform_indices = @transform_7, window_bounds = array<i64: 1, 32>}, {pipeline_mode = #tpu.pipeline_mode<synchronous>, transform_indices = @transform_8, window_bounds = array<i64: 32, 32>}, {pipeline_mode = #tpu.pipeline_mode<synchronous>, transform_indices = @transform_9, window_bounds = array<i64: 1, 32>}, {pipeline_mode = #tpu.pipeline_mode<synchronous>, transform_indices = @transform_10, window_bounds = array<i64: 32, 32>}, {pipeline_mode = #tpu.pipeline_mode<synchronous>, transform_indices = @transform_11, window_bounds = array<i64: 1, 32>}, {transform_indices = @transform_12, window_bounds = array<i64: 1, 16, 32>}]} {
    %c0 = arith.constant 0 : index
    %c0_0 = arith.constant 0 : index
    %c0_1 = arith.constant 0 : index
    %0 = vector.load %arg1[%c0, %c0_0, %c0_1] : memref<1x16x32xf32, #tpu.memory_space<vmem>>, vector<1x16x32xf32>
    %1 = vector.shape_cast %0 : vector<1x16x32xf32> to vector<16x32xf32>
    %c0_2 = arith.constant 0 : index
    %c0_3 = arith.constant 0 : index
    %c0_4 = arith.constant 0 : index
    %2 = vector.load %arg2[%c0_2, %c0_3, %c0_4] : memref<1x8x16xf32, #tpu.memory_space<vmem>>, vector<1x8x16xf32>
    %3 = vector.shape_cast %2 : vector<1x8x16xf32> to vector<8x16xf32>
    %c0_5 = arith.constant 0 : index
    %c0_6 = arith.constant 0 : index
    %4 = vector.load %arg3[%c0_5, %c0_6] : memref<16x32xf32, #tpu.memory_space<vmem>>, vector<16x32xf32>
    %cst = arith.constant dense<0.000000e+00> : vector<8x32xf32>
    %5 = tpu.matmul %3, %4, %cst {dimension_numbers = #tpu.dot_dimension_numbers<[1], [0], [0], [1], [0, 0, 1, 1], [], []>} : vector<8x16xf32>, vector<16x32xf32>, vector<8x32xf32> -> vector<8x32xf32>
    %c0_7 = arith.constant 0 : index
    %c0_8 = arith.constant 0 : index
    %6 = vector.load %arg4[%c0_7, %c0_8] : memref<1x32xf32, #tpu.memory_space<vmem>>, vector<1x32xf32>
    %7 = vector.broadcast %6 : vector<1x32xf32> to vector<8x32xf32>
    %8 = arith.addf %5, %7 : vector<8x32xf32>
    %c0_9 = arith.constant 0 : index
    %c0_10 = arith.constant 0 : index
    %9 = vector.load %arg5[%c0_9, %c0_10] : memref<32x32xf32, #tpu.memory_space<vmem>>, vector<32x32xf32>
    %cst_11 = arith.constant dense<0.000000e+00> : vector<16x32xf32>
    %10 = tpu.matmul %1, %9, %cst_11 {dimension_numbers = #tpu.dot_dimension_numbers<[1], [0], [0], [1], [0, 0, 1, 1], [], []>} : vector<16x32xf32>, vector<32x32xf32>, vector<16x32xf32> -> vector<16x32xf32>
    %c0_12 = arith.constant 0 : index
    %c0_13 = arith.constant 0 : index
    %11 = vector.load %arg6[%c0_12, %c0_13] : memref<1x32xf32, #tpu.memory_space<vmem>>, vector<1x32xf32>
    %12 = vector.broadcast %11 : vector<1x32xf32> to vector<16x32xf32>
    %13 = arith.addf %10, %12 : vector<16x32xf32>
    %cst_14 = arith.constant 0.353553385 : f32
    %14 = vector.broadcast %cst_14 : f32 to vector<16x32xf32>
    %15 = arith.mulf %13, %14 : vector<16x32xf32>
    %c0_15 = arith.constant 0 : index
    %c0_16 = arith.constant 0 : index
    %16 = vector.load %arg7[%c0_15, %c0_16] : memref<32x32xf32, #tpu.memory_space<vmem>>, vector<32x32xf32>
    %cst_17 = arith.constant dense<0.000000e+00> : vector<8x32xf32>
    %17 = tpu.matmul %8, %16, %cst_17 {dimension_numbers = #tpu.dot_dimension_numbers<[1], [0], [0], [1], [0, 0, 1, 1], [], []>} : vector<8x32xf32>, vector<32x32xf32>, vector<8x32xf32> -> vector<8x32xf32>
    %c0_18 = arith.constant 0 : index
    %c0_19 = arith.constant 0 : index
    %18 = vector.load %arg8[%c0_18, %c0_19] : memref<1x32xf32, #tpu.memory_space<vmem>>, vector<1x32xf32>
    %19 = vector.broadcast %18 : vector<1x32xf32> to vector<8x32xf32>
    %20 = arith.addf %17, %19 : vector<8x32xf32>
    %c0_20 = arith.constant 0 : index
    %c0_21 = arith.constant 0 : index
    %21 = vector.load %arg9[%c0_20, %c0_21] : memref<32x32xf32, #tpu.memory_space<vmem>>, vector<32x32xf32>
    %cst_22 = arith.constant dense<0.000000e+00> : vector<8x32xf32>
    %22 = tpu.matmul %8, %21, %cst_22 {dimension_numbers = #tpu.dot_dimension_numbers<[1], [0], [0], [1], [0, 0, 1, 1], [], []>} : vector<8x32xf32>, vector<32x32xf32>, vector<8x32xf32> -> vector<8x32xf32>
    %c0_23 = arith.constant 0 : index
    %c0_24 = arith.constant 0 : index
    %23 = vector.load %arg10[%c0_23, %c0_24] : memref<1x32xf32, #tpu.memory_space<vmem>>, vector<1x32xf32>
    %24 = vector.broadcast %23 : vector<1x32xf32> to vector<8x32xf32>
    %25 = arith.addf %22, %24 : vector<8x32xf32>
    %26 = vector.shape_cast %15 : vector<16x32xf32> to vector<1x16x32xf32>
    %27 = vector.shape_cast %20 : vector<8x32xf32> to vector<1x8x32xf32>
    %28 = vector.shape_cast %25 : vector<8x32xf32> to vector<1x8x32xf32>
    %29 = vector.extract_strided_slice %26 {offsets = [0, 0, 0], sizes = [1, 16, 8], strides = [1, 1, 1]} : vector<1x16x32xf32> to vector<1x16x8xf32>
    %30 = vector.extract_strided_slice %27 {offsets = [0, 0, 0], sizes = [1, 8, 8], strides = [1, 1, 1]} : vector<1x8x32xf32> to vector<1x8x8xf32>
    %31 = vector.extract_strided_slice %28 {offsets = [0, 0, 0], sizes = [1, 8, 8], strides = [1, 1, 1]} : vector<1x8x32xf32> to vector<1x8x8xf32>
    "tpu.trace_start"() <{level = 10 : i32, message = "bqd,bkd->bqk"}> : () -> ()
    %cst_25 = arith.constant dense<0.000000e+00> : vector<1x16x8xf32>
    %32 = tpu.matmul %29, %30, %cst_25 {dimension_numbers = #tpu.dot_dimension_numbers<[2], [2], [1], [1], [0, 0, 0, 1, 1, 1], [0], [0]>} : vector<1x16x8xf32>, vector<1x8x8xf32>, vector<1x16x8xf32> -> vector<1x16x8xf32>
    "tpu.trace_stop"() : () -> ()
    %cst_26 = arith.constant dense<0xFF800000> : vector<1x16xf32>
    %33 = vector.multi_reduction <maximumf>, %32, %cst_26 [2] : vector<1x16x8xf32> to vector<1x16xf32>
    %34 = vector.shape_cast %33 : vector<1x16xf32> to vector<1x16x1xf32>
    %35 = vector.broadcast %34 : vector<1x16x1xf32> to vector<1x16x8xf32>
    %36 = arith.subf %32, %35 : vector<1x16x8xf32>
    %37 = math.exp %36 : vector<1x16x8xf32>
    %cst_27 = arith.constant dense<0.000000e+00> : vector<1x16xf32>
    %38 = vector.multi_reduction <add>, %37, %cst_27 [2] : vector<1x16x8xf32> to vector<1x16xf32>
    %39 = vector.shape_cast %38 : vector<1x16xf32> to vector<1x16x1xf32>
    %40 = tpu.reciprocal %39 {approx = true} : vector<1x16x1xf32> -> vector<1x16x1xf32>
    %41 = vector.broadcast %40 : vector<1x16x1xf32> to vector<1x16x8xf32>
    %42 = arith.mulf %37, %41 : vector<1x16x8xf32>
    "tpu.trace_start"() <{level = 10 : i32, message = "bqk,bkd->bqd"}> : () -> ()
    %cst_28 = arith.constant dense<0.000000e+00> : vector<1x16x8xf32>
    %43 = tpu.matmul %42, %31, %cst_28 {dimension_numbers = #tpu.dot_dimension_numbers<[2], [1], [1], [2], [0, 0, 0, 1, 1, 2], [0], [0]>} : vector<1x16x8xf32>, vector<1x8x8xf32>, vector<1x16x8xf32> -> vector<1x16x8xf32>
    "tpu.trace_stop"() : () -> ()
    %44 = vector.shape_cast %43 : vector<1x16x8xf32> to vector<16x8xf32>
    %c0_29 = arith.constant 0 : index
    %c0_30 = arith.constant 0 : index
    %45 = vector.load %arg14[%c0_29, %c0_30] : memref<16x32xf32, #tpu.memory_space<vmem>>, vector<16x8xf32>
    tpu.vector_store %arg14[%c0_29, %c0_30], %44 {strides = array<i32>} : memref<16x32xf32, #tpu.memory_space<vmem>>, vector<16x8xf32>,
    %46 = vector.extract_strided_slice %26 {offsets = [0, 0, 8], sizes = [1, 16, 8], strides = [1, 1, 1]} : vector<1x16x32xf32> to vector<1x16x8xf32>
    %47 = vector.extract_strided_slice %27 {offsets = [0, 0, 8], sizes = [1, 8, 8], strides = [1, 1, 1]} : vector<1x8x32xf32> to vector<1x8x8xf32>
    %48 = vector.extract_strided_slice %28 {offsets = [0, 0, 8], sizes = [1, 8, 8], strides = [1, 1, 1]} : vector<1x8x32xf32> to vector<1x8x8xf32>
    "tpu.trace_start"() <{level = 10 : i32, message = "bqd,bkd->bqk"}> : () -> ()
    %cst_31 = arith.constant dense<0.000000e+00> : vector<1x16x8xf32>
    %49 = tpu.matmul %46, %47, %cst_31 {dimension_numbers = #tpu.dot_dimension_numbers<[2], [2], [1], [1], [0, 0, 0, 1, 1, 1], [0], [0]>} : vector<1x16x8xf32>, vector<1x8x8xf32>, vector<1x16x8xf32> -> vector<1x16x8xf32>
    "tpu.trace_stop"() : () -> ()
    %cst_32 = arith.constant dense<0xFF800000> : vector<1x16xf32>
    %50 = vector.multi_reduction <maximumf>, %49, %cst_32 [2] : vector<1x16x8xf32> to vector<1x16xf32>
    %51 = vector.shape_cast %50 : vector<1x16xf32> to vector<1x16x1xf32>
    %52 = vector.broadcast %51 : vector<1x16x1xf32> to vector<1x16x8xf32>
    %53 = arith.subf %49, %52 : vector<1x16x8xf32>
    %54 = math.exp %53 : vector<1x16x8xf32>
    %cst_33 = arith.constant dense<0.000000e+00> : vector<1x16xf32>
    %55 = vector.multi_reduction <add>, %54, %cst_33 [2] : vector<1x16x8xf32> to vector<1x16xf32>
    %56 = vector.shape_cast %55 : vector<1x16xf32> to vector<1x16x1xf32>
    %57 = tpu.reciprocal %56 {approx = true} : vector<1x16x1xf32> -> vector<1x16x1xf32>
    %58 = vector.broadcast %57 : vector<1x16x1xf32> to vector<1x16x8xf32>
    %59 = arith.mulf %54, %58 : vector<1x16x8xf32>
    "tpu.trace_start"() <{level = 10 : i32, message = "bqk,bkd->bqd"}> : () -> ()
    %cst_34 = arith.constant dense<0.000000e+00> : vector<1x16x8xf32>
    %60 = tpu.matmul %59, %48, %cst_34 {dimension_numbers = #tpu.dot_dimension_numbers<[2], [1], [1], [2], [0, 0, 0, 1, 1, 2], [0], [0]>} : vector<1x16x8xf32>, vector<1x8x8xf32>, vector<1x16x8xf32> -> vector<1x16x8xf32>
    "tpu.trace_stop"() : () -> ()
    %61 = vector.shape_cast %60 : vector<1x16x8xf32> to vector<16x8xf32>
    %c0_35 = arith.constant 0 : index
    %c8 = arith.constant 8 : index
    %62 = vector.load %arg14[%c0_35, %c8] : memref<16x32xf32, #tpu.memory_space<vmem>>, vector<16x8xf32>
    tpu.vector_store %arg14[%c0_35, %c8], %61 {strides = array<i32>} : memref<16x32xf32, #tpu.memory_space<vmem>>, vector<16x8xf32>,
    %63 = vector.extract_strided_slice %26 {offsets = [0, 0, 16], sizes = [1, 16, 8], strides = [1, 1, 1]} : vector<1x16x32xf32> to vector<1x16x8xf32>
    %64 = vector.extract_strided_slice %27 {offsets = [0, 0, 16], sizes = [1, 8, 8], strides = [1, 1, 1]} : vector<1x8x32xf32> to vector<1x8x8xf32>
    %65 = vector.extract_strided_slice %28 {offsets = [0, 0, 16], sizes = [1, 8, 8], strides = [1, 1, 1]} : vector<1x8x32xf32> to vector<1x8x8xf32>
    "tpu.trace_start"() <{level = 10 : i32, message = "bqd,bkd->bqk"}> : () -> ()
    %cst_36 = arith.constant dense<0.000000e+00> : vector<1x16x8xf32>
    %66 = tpu.matmul %63, %64, %cst_36 {dimension_numbers = #tpu.dot_dimension_numbers<[2], [2], [1], [1], [0, 0, 0, 1, 1, 1], [0], [0]>} : vector<1x16x8xf32>, vector<1x8x8xf32>, vector<1x16x8xf32> -> vector<1x16x8xf32>
    "tpu.trace_stop"() : () -> ()
    %cst_37 = arith.constant dense<0xFF800000> : vector<1x16xf32>
    %67 = vector.multi_reduction <maximumf>, %66, %cst_37 [2] : vector<1x16x8xf32> to vector<1x16xf32>
    %68 = vector.shape_cast %67 : vector<1x16xf32> to vector<1x16x1xf32>
    %69 = vector.broadcast %68 : vector<1x16x1xf32> to vector<1x16x8xf32>
    %70 = arith.subf %66, %69 : vector<1x16x8xf32>
    %71 = math.exp %70 : vector<1x16x8xf32>
    %cst_38 = arith.constant dense<0.000000e+00> : vector<1x16xf32>
    %72 = vector.multi_reduction <add>, %71, %cst_38 [2] : vector<1x16x8xf32> to vector<1x16xf32>
    %73 = vector.shape_cast %72 : vector<1x16xf32> to vector<1x16x1xf32>
    %74 = tpu.reciprocal %73 {approx = true} : vector<1x16x1xf32> -> vector<1x16x1xf32>
    %75 = vector.broadcast %74 : vector<1x16x1xf32> to vector<1x16x8xf32>
    %76 = arith.mulf %71, %75 : vector<1x16x8xf32>
    "tpu.trace_start"() <{level = 10 : i32, message = "bqk,bkd->bqd"}> : () -> ()
    %cst_39 = arith.constant dense<0.000000e+00> : vector<1x16x8xf32>
    %77 = tpu.matmul %76, %65, %cst_39 {dimension_numbers = #tpu.dot_dimension_numbers<[2], [1], [1], [2], [0, 0, 0, 1, 1, 2], [0], [0]>} : vector<1x16x8xf32>, vector<1x8x8xf32>, vector<1x16x8xf32> -> vector<1x16x8xf32>
    "tpu.trace_stop"() : () -> ()
    %78 = vector.shape_cast %77 : vector<1x16x8xf32> to vector<16x8xf32>
    %c0_40 = arith.constant 0 : index
    %c16 = arith.constant 16 : index
    %79 = vector.load %arg14[%c0_40, %c16] : memref<16x32xf32, #tpu.memory_space<vmem>>, vector<16x8xf32>
    tpu.vector_store %arg14[%c0_40, %c16], %78 {strides = array<i32>} : memref<16x32xf32, #tpu.memory_space<vmem>>, vector<16x8xf32>,
    %80 = vector.extract_strided_slice %26 {offsets = [0, 0, 24], sizes = [1, 16, 8], strides = [1, 1, 1]} : vector<1x16x32xf32> to vector<1x16x8xf32>
    %81 = vector.extract_strided_slice %27 {offsets = [0, 0, 24], sizes = [1, 8, 8], strides = [1, 1, 1]} : vector<1x8x32xf32> to vector<1x8x8xf32>
    %82 = vector.extract_strided_slice %28 {offsets = [0, 0, 24], sizes = [1, 8, 8], strides = [1, 1, 1]} : vector<1x8x32xf32> to vector<1x8x8xf32>
    "tpu.trace_start"() <{level = 10 : i32, message = "bqd,bkd->bqk"}> : () -> ()
    %cst_41 = arith.constant dense<0.000000e+00> : vector<1x16x8xf32>
    %83 = tpu.matmul %80, %81, %cst_41 {dimension_numbers = #tpu.dot_dimension_numbers<[2], [2], [1], [1], [0, 0, 0, 1, 1, 1], [0], [0]>} : vector<1x16x8xf32>, vector<1x8x8xf32>, vector<1x16x8xf32> -> vector<1x16x8xf32>
    "tpu.trace_stop"() : () -> ()
    %cst_42 = arith.constant dense<0xFF800000> : vector<1x16xf32>
    %84 = vector.multi_reduction <maximumf>, %83, %cst_42 [2] : vector<1x16x8xf32> to vector<1x16xf32>
    %85 = vector.shape_cast %84 : vector<1x16xf32> to vector<1x16x1xf32>
    %86 = vector.broadcast %85 : vector<1x16x1xf32> to vector<1x16x8xf32>
    %87 = arith.subf %83, %86 : vector<1x16x8xf32>
    %88 = math.exp %87 : vector<1x16x8xf32>
    %cst_43 = arith.constant dense<0.000000e+00> : vector<1x16xf32>
    %89 = vector.multi_reduction <add>, %88, %cst_43 [2] : vector<1x16x8xf32> to vector<1x16xf32>
    %90 = vector.shape_cast %89 : vector<1x16xf32> to vector<1x16x1xf32>
    %91 = tpu.reciprocal %90 {approx = true} : vector<1x16x1xf32> -> vector<1x16x1xf32>
    %92 = vector.broadcast %91 : vector<1x16x1xf32> to vector<1x16x8xf32>
    %93 = arith.mulf %88, %92 : vector<1x16x8xf32>
    "tpu.trace_start"() <{level = 10 : i32, message = "bqk,bkd->bqd"}> : () -> ()
    %cst_44 = arith.constant dense<0.000000e+00> : vector<1x16x8xf32>
    %94 = tpu.matmul %93, %82, %cst_44 {dimension_numbers = #tpu.dot_dimension_numbers<[2], [1], [1], [2], [0, 0, 0, 1, 1, 2], [0], [0]>} : vector<1x16x8xf32>, vector<1x8x8xf32>, vector<1x16x8xf32> -> vector<1x16x8xf32>
    "tpu.trace_stop"() : () -> ()
    %95 = vector.shape_cast %94 : vector<1x16x8xf32> to vector<16x8xf32>
    %c0_45 = arith.constant 0 : index
    %c24 = arith.constant 24 : index
    %96 = vector.load %arg14[%c0_45, %c24] : memref<16x32xf32, #tpu.memory_space<vmem>>, vector<16x8xf32>
    tpu.vector_store %arg14[%c0_45, %c24], %95 {strides = array<i32>} : memref<16x32xf32, #tpu.memory_space<vmem>>, vector<16x8xf32>,
    %c0_46 = arith.constant 0 : index
    %c0_47 = arith.constant 0 : index
    %97 = vector.load %arg14[%c0_46, %c0_47] : memref<16x32xf32, #tpu.memory_space<vmem>>, vector<16x32xf32>
    %c0_48 = arith.constant 0 : index
    %c0_49 = arith.constant 0 : index
    %98 = vector.load %arg11[%c0_48, %c0_49] : memref<32x32xf32, #tpu.memory_space<vmem>>, vector<32x32xf32>
    %cst_50 = arith.constant dense<0.000000e+00> : vector<16x32xf32>
    %99 = tpu.matmul %97, %98, %cst_50 {dimension_numbers = #tpu.dot_dimension_numbers<[1], [0], [0], [1], [0, 0, 1, 1], [], []>} : vector<16x32xf32>, vector<32x32xf32>, vector<16x32xf32> -> vector<16x32xf32>
    %c0_51 = arith.constant 0 : index
    %c0_52 = arith.constant 0 : index
    %100 = vector.load %arg12[%c0_51, %c0_52] : memref<1x32xf32, #tpu.memory_space<vmem>>, vector<1x32xf32>
    %101 = vector.broadcast %100 : vector<1x32xf32> to vector<16x32xf32>
    %102 = arith.addf %99, %101 : vector<16x32xf32>
    %103 = arith.addf %1, %102 : vector<16x32xf32>
    %104 = vector.shape_cast %103 : vector<16x32xf32> to vector<1x16x32xf32>
    %c0_53 = arith.constant 0 : index
    %c0_54 = arith.constant 0 : index
    %c0_55 = arith.constant 0 : index
    %105 = vector.load %arg13[%c0_53, %c0_54, %c0_55] : memref<1x16x32xf32, #tpu.memory_space<vmem>>, vector<1x16x32xf32>
    tpu.vector_store %arg13[%c0_53, %c0_54, %c0_55], %104 {strides = array<i32>} : memref<1x16x32xf32, #tpu.memory_space<vmem>>, vector<1x16x32xf32>,
    return
  }
  func.func @transform_0(%arg0: i32) -> (i32, i32, i32) {
    %c0_i32 = arith.constant 0 : i32
    %c0_i32_0 = arith.constant 0 : i32
    %c0_i32_1 = arith.constant 0 : i32
    return %arg0, %c0_i32, %c0_i32_0 : i32, i32, i32
  }
  func.func @transform_1(%arg0: i32) -> (i32, i32, i32) {
    %c0_i32 = arith.constant 0 : i32
    %c0_i32_0 = arith.constant 0 : i32
    %c0_i32_1 = arith.constant 0 : i32
    return %arg0, %c0_i32, %c0_i32_0 : i32, i32, i32
  }
  func.func @transform_2(%arg0: i32) -> (i32, i32) {
    %c0_i32 = arith.constant 0 : i32
    %c0_i32_0 = arith.constant 0 : i32
    %c0_i32_1 = arith.constant 0 : i32
    return %c0_i32, %c0_i32_0 : i32, i32
  }
  func.func @transform_3(%arg0: i32) -> (i32, i32) {
    %c0_i32 = arith.constant 0 : i32
    %c0_i32_0 = arith.constant 0 : i32
    %c0_i32_1 = arith.constant 0 : i32
    return %c0_i32, %c0_i32_0 : i32, i32
  }
  func.func @transform_4(%arg0: i32) -> (i32, i32) {
    %c0_i32 = arith.constant 0 : i32
    %c0_i32_0 = arith.constant 0 : i32
    %c0_i32_1 = arith.constant 0 : i32
    return %c0_i32, %c0_i32_0 : i32, i32
  }
  func.func @transform_5(%arg0: i32) -> (i32, i32) {
    %c0_i32 = arith.constant 0 : i32
    %c0_i32_0 = arith.constant 0 : i32
    %c0_i32_1 = arith.constant 0 : i32
    return %c0_i32, %c0_i32_0 : i32, i32
  }
  func.func @transform_6(%arg0: i32) -> (i32, i32) {
    %c0_i32 = arith.constant 0 : i32
    %c0_i32_0 = arith.constant 0 : i32
    %c0_i32_1 = arith.constant 0 : i32
    return %c0_i32, %c0_i32_0 : i32, i32
  }
  func.func @transform_7(%arg0: i32) -> (i32, i32) {
    %c0_i32 = arith.constant 0 : i32
    %c0_i32_0 = arith.constant 0 : i32
    %c0_i32_1 = arith.constant 0 : i32
    return %c0_i32, %c0_i32_0 : i32, i32
  }
  func.func @transform_8(%arg0: i32) -> (i32, i32) {
    %c0_i32 = arith.constant 0 : i32
    %c0_i32_0 = arith.constant 0 : i32
    %c0_i32_1 = arith.constant 0 : i32
    return %c0_i32, %c0_i32_0 : i32, i32
  }
  func.func @transform_9(%arg0: i32) -> (i32, i32) {
    %c0_i32 = arith.constant 0 : i32
    %c0_i32_0 = arith.constant 0 : i32
    %c0_i32_1 = arith.constant 0 : i32
    return %c0_i32, %c0_i32_0 : i32, i32
  }
  func.func @transform_10(%arg0: i32) -> (i32, i32) {
    %c0_i32 = arith.constant 0 : i32
    %c0_i32_0 = arith.constant 0 : i32
    %c0_i32_1 = arith.constant 0 : i32
    return %c0_i32, %c0_i32_0 : i32, i32
  }
  func.func @transform_11(%arg0: i32) -> (i32, i32) {
    %c0_i32 = arith.constant 0 : i32
    %c0_i32_0 = arith.constant 0 : i32
    %c0_i32_1 = arith.constant 0 : i32
    return %c0_i32, %c0_i32_0 : i32, i32
  }
  func.func @transform_12(%arg0: i32) -> (i32, i32, i32) {
    %c0_i32 = arith.constant 0 : i32
    %c0_i32_0 = arith.constant 0 : i32
    %c0_i32_1 = arith.constant 0 : i32
    return %arg0, %c0_i32, %c0_i32_0 : i32, i32, i32
  }
}

</mosaic_0001>

<bundles_post_ra>
// kernel: tpu_custom_call.1
= control target key start
LH: loop header
LB: loop body
LE: loop exit
PB: predicated region body
PF: predicated region fallthrough
CT: control target
= control target key end

     0   :  { %s2183_s0 = inlined_call_operand.hbm [shape: f32[2,16,32], index: 0, kind: input, shape index: {}]   ;;  %s2184_s1 = inlined_call_operand.hbm [shape: f32[2,8,16], index: 1, kind: input, shape index: {}]   ;;  %s2185_s2 = inlined_call_operand.hbm [shape: f32[16,32], index: 2, kind: input, shape index: {}]   ;;  %s2186_s3 = inlined_call_operand.vmem [shape: f32[1,32], index: 3, kind: input, shape index: {}]   ;;  %s2187_s4 = inlined_call_operand.hbm [shape: f32[32,32], index: 4, kind: input, shape index: {}]   ;;  %s2188_s5 = inlined_call_operand.vmem [shape: f32[1,32], index: 5, kind: input, shape index: {}]   ;;  %s2189_s6 = inlined_call_operand.hbm [shape: f32[32,32], index: 6, kind: input, shape index: {}]   ;;  %s2190_s7 = inlined_call_operand.vmem [shape: f32[1,32], index: 7, kind: input, shape index: {}]   ;;  %s2191_s8 = inlined_call_operand.hbm [shape: f32[32,32], index: 8, kind: input, shape index: {}]   ;;  %s2192_s9 = inlined_call_operand.vmem [shape: f32[1,32], index: 9, kind: input, shape index: {}]   ;;  %s2193_s10 = inlined_call_operand.hbm [shape: f32[32,32], index: 10, kind: input, shape index: {}]   ;;  %s2194_s11 = inlined_call_operand.vmem [shape: f32[1,32], index: 11, kind: input, shape index: {}]   ;;  %s2195_s12 = inlined_call_operand.hbm [shape: f32[2,16,32], index: 12, kind: output, shape index: {}]  }
   0x1   :  { %2204 = sst [smem:[#allocation27_spill]] %s2185_s2 }
   0x2   :  { %2205 = sst [smem:[#allocation28_spill]] %s2187_s4 }
   0x3   :  { %2206 = sst [smem:[#allocation29_spill]] %s2189_s6 }
   0x4   :  { %2207 = sst [smem:[#allocation30_spill]] %s2191_s8 }
   0x5   :  { %2208 = sst [smem:[#allocation31_spill]] %s2193_s10 }
   0x6   :  { %2209 = sst [smem:[#allocation32_spill]] %s2195_s12 }
   0x7   :  { %17 = vsyncpa [#allocation4], 0 }
   0x8   :  { %19 = vsyncpa [#allocation4 + $0x1], 0 }
   0x9   :  { %20 = vsyncpa [#allocation7], 0 }
   0xa   :  { %22 = vsyncpa [#allocation7 + $0x1], 0 }
   0xb   :  { %23 = vsyncpa [#allocation10], 0 }
   0xc   :  { %24 = vsyncpa [#allocation13], 0 }
   0xd   :  { %25 = vsyncpa [#allocation5], 0 }
   0xe   :  { %27 = vsyncpa [#allocation5 + $0x1], 0  ;;  %s1853_s21 = smov 0   ;;  %s1855_s22 = smov 0  }
   0xf   :  { %s1857_s23 = smov 0   ;;  %s1859_s24 = smov 0  }
  0x10 LB: > { %2210 = sst [smem:[#allocation22_spill]] %s1760_s21  ;;  %s1877_s28 = sadd.s32 4294967295, %s1772_s24   ;;  %s1772_s24 = sphi %s1859_s24, %s2233_s24   ;;  %s1768_s23 = sphi %s1857_s23, %s2235_s23   ;;  %s1764_s22 = sphi %s1855_s22, %s2237_s22   ;;  %s1760_s21 = sphi %s1853_s21, %s2236_s21  }
  0x11   : > { %2211 = sst [smem:[#allocation23_spill]] %s1768_s23  ;;  %p1277_p0 = scmp.ge.s32.totalorder %s1772_s24, 1 }
  0x12   : > { %s2212_s2 = sld [smem:[#allocation27_spill]]  ;;  %p54_p1 = scmp.eq.s32.totalorder %s1877_s28, 0 }
  0x13   : > { %p326_p2 = scmp.lt.s32.totalorder %s1772_s24, 3  ;;  %s1774_s30 = smov [#allocation8]  }
  0x14   : > { %s339_s13 = sshll.u32 %s1774_s30, 4  ;;  %s2214_s4 = sld [smem:[#allocation28_spill]]  ;;  %s340_s13 = int_to_ptr.vmem [resolvable:$true] %s339_s13 }
  0x15   : > { %p1882_p3 = pnand %p1277_p0, %p326_p2  ;;  %s2216_s8 = sld [smem:[#allocation30_spill]] }
  0x16   : > { %s1775_s25 = smov [#allocation9]   ;;  %s2196_s30 = smov 128  }
  0x17   : > { %p1358_p4 = pneg %p1882_p3  ;;  %s356_s26 = sshll.u32 %s1775_s25, 4  ;;  %s357_s26 = int_to_ptr.vmem [resolvable:$true] %s356_s26 }
  0x18   : > { %s337_s27 = sshll.u32 %s2212_s2, 4  ;;  %s2197_s2 = smov 8   ;;  %s338_s27 = int_to_ptr.hbm [resolvable:$true] %s337_s27 }
  0x19   : > { %p1894_p6 = pnand %p1358_p4, %p54_p1  ;;  %s2217_s6 = sld [smem:[#allocation29_spill]] }
  0x1a   : > { %s354_s16 = sshll.u32 %s2214_s4, 4  ;;  %s1778_s19 = smov [#allocation12]   ;;  %s355_s16 = int_to_ptr.hbm [resolvable:$true] %s354_s16 }
  0x1b   : > { %s388_s20 = sshll.u32 %s2216_s8, 4  ;;  %s390_s25 = sshll.u32 %s1778_s19, 4  ;;  %s389_s20 = int_to_ptr.hbm [resolvable:$true] %s388_s20  ;;  %s391_s25 = int_to_ptr.vmem [resolvable:$true] %s390_s25 }
  0x1c   : > { %1361 = dma.hbm_to_vmem [thread:$0]  (!%p1894_p6), %s338_s27, 256, %s340_s13, [#allocation7], %s2196_s30, %s2196_s30, %s2197_s2  }
  0x1d   : > { %1364 = dma.hbm_to_vmem [thread:$0]  (!%p1894_p6), %s355_s16, 512, %s357_s26, [#allocation10], %s2196_s30, %s2196_s30, %s2197_s2  }
  0x1e   : > { %1370 = dma.hbm_to_vmem [thread:$0]  (!%p1894_p6), %s389_s20, 512, %s391_s25, [#allocation13], %s2196_s30, %s2196_s30, %s2197_s2  }
  0x1f   : > { %s371_s18 = sshll.u32 %s2217_s6, 4  ;;  %s1779_s27 = smov [#allocation11]   ;;  %s372_s18 = int_to_ptr.hbm [resolvable:$true] %s371_s18 }
  0x20   : > { %s373_s13 = sshll.u32 %s1779_s27, 4  ;;  %s2218_s10 = sld [smem:[#allocation31_spill]]  ;;  %s374_s13 = int_to_ptr.vmem [resolvable:$true] %s373_s13 }
  0x21   : > { %1367 = dma.hbm_to_vmem [thread:$0]  (!%p1894_p6), %s372_s18, 512, %s374_s13, [#allocation10], %s2196_s30, %s2196_s30, %s2197_s2  }
  0x22   : > { %s1780_s20 = smov [#allocation14]   ;;  %s1276_s19 = sadd.s32 4294967294, %s1772_s24  }
  0x23   : > { %s407_s15 = sshll.u32 %s1780_s20, 4  ;;  %s1934_s25 = sadd.s32 1, %s1772_s24   ;;  %s408_s15 = int_to_ptr.vmem [resolvable:$true] %s407_s15 }
  0x24   : > { %2219 = sst [smem:[#allocation24_spill]] %s1934_s25  ;;  %s40_s27 = sadd.s32 1, %s1768_s23 }
  0x25   : > { %s37_s16 = ssub.s32 %s1772_s24, %s1934_s25  ;;  %p47_p7 = scmp.ne.s32.totalorder %s1768_s23, %s1764_s22 }
  0x26   : > { %s405_s14 = sshll.u32 %s2218_s10, 4  ;;  %p38_p8 = scmp.eq.s32.totalorder %s37_s16, 0  ;;  %s406_s14 = int_to_ptr.hbm [resolvable:$true] %s405_s14 }
  0x27   : > { %1373 = dma.hbm_to_vmem [thread:$0]  (!%p1894_p6), %s406_s14, 512, %s408_s15, [#allocation13], %s2196_s30, %s2196_s30, %s2197_s2  }
  0x28   : > { %p48_p9 = scmp.eq.s32.totalorder %s1772_s24, 0  ;;  %p53_p10 = scmp.ne.s32.totalorder %s1764_s22, %s1760_s21 }
  0x29   : > { %p313_p11 = scmp.eq.s32.totalorder %s1877_s28, 1  ;;  %p319_p2 = scmp.eq.s32.totalorder %s1276_s19, 1 }
  0x2a   : > { %s1946_s18 = scalar_select %p38_p8, %s1768_s23, %s40_s27  }
  0x2b   : > { %p1948_p12 = por %p48_p9, %p47_p7  ;;  %p1954_p13 = por %p54_p1, %p53_p10 }
  0x2c   : > { %2220 = sst [smem:[#allocation25_spill]] %s1946_s18  ;;  %p1958_p0 = por %p313_p11, %p47_p7 }
  0x2d   : > { %p1390_p4 = scmp.lt.s32.totalorder %s1772_s24, 2  ;;  %s1964_s14 = sand.u32 1, %s1768_s23  }
  0x2e   : > { %p1966_p6 = por %p319_p2, %p53_p10  ;;  %s1284_s15 = sshll.u32 %s1964_s14, 4 }
  0x2f   : > { %s1330_s27 = sshll.u32 %s1772_s24, 4  ;;  %s428_s6 = scalar_lea.vmem [#allocation3], %s1284_s15 }
  0x30   : > { %s2224_s20 = scalar_select %p1966_p6, 1, 0 }
  0x31   : > { %s433_s2 = scalar_lea.hbm %s2183_s0, %s1330_s27  ;;  %s436_s8 = sshll.u32 %s428_s6, 4  ;;  %s437_s8 = int_to_ptr.vmem [resolvable:$true] %s436_s8 }
  0x32   : > { %2225 = sst [smem:[#allocation26_spill]] %s2224_s20  ;;  %s434_s4 = sshll.u32 %s433_s2, 4  ;;  %s435_s4 = int_to_ptr.hbm [resolvable:$true] %s434_s4 }
  0x33   : > { %p1977_p7 = pnand %p1390_p4, %p1948_p12  ;;  %s446_s10 = sand.u32 1, %s1772_s24  }
  0x34   : > { %s1287_s18 = sshll.u32 %s1964_s14, 3  ;;  %s425_s23 = scalar_lea.sflag [#allocation4], %s1964_s14 }
  0x35   : > { %s1630_s25 = sshra.s32 %s435_s4, 4  ;;  %p1634_p9 = pneg %p1977_p7  ;;  %s1631_s25 = int_to_ptr.hbm [resolvable:$true] %s1630_s25 }
  0x36   : > { %s1632_s20 = scalar_lea.hbm %s1631_s25, 16  ;;  %s1637_s30 = scalar_lea.hbm %s2183_s0, 32 }
  0x37   : > { %p1633_p8 = scmp.ne.s32.totalorder %s1631_s25, %s1632_s20  ;;  %p1638_p12 = scmp.lt.s32.totalorder %s1631_s25, %s2183_s0 }
  0x38   : > { %p1639_p2 = scmp.lt.s32.totalorder %s1637_s30, %s1632_s20 }
  0x39   : > { %p1635_p10 = pnand %p1634_p9, %p1633_p8 }
  0x3a   : > { %p1640_p4 = por %p1639_p2, %p1638_p12 }
  0x3b   : > { %p1636_p11 = pneg %p1635_p10 }
  0x3d   : > { %p1641_p5 = pnand %p1640_p4, %p1636_p11 }
  0x3f   : > { %1644 = shalt.err (!%p1641_p5)
}
  0x40   : > { %s2227_s14 = smov 8   ;;  %s2228_s27 = smov 128  }
  0x41   : > { %1377 = dma.hbm_to_vmem [thread:$0]  (!%p1977_p7), %s435_s4, 256, %s437_s8, %s425_s23, %s2228_s27, %s2228_s27, %s2227_s14  }
  0x42   : > { %s1288_s16 = sshll.u32 %s1772_s24, 3  ;;  %s450_s21 = scalar_lea.vmem [#allocation6], %s1287_s18 }
  0x43   : > { %s458_s2 = sshll.u32 %s450_s21, 4  ;;  %s454_s17 = scalar_lea.hbm %s2184_s1, %s1288_s16  ;;  %s459_s2 = int_to_ptr.vmem [resolvable:$true] %s458_s2 }
  0x44   : > { %s456_s25 = sshll.u32 %s454_s17, 4  ;;  %s447_s20 = scalar_lea.sflag [#allocation7], %s446_s10  ;;  %s457_s25 = int_to_ptr.hbm [resolvable:$true] %s456_s25 }
  0x45   : > { %s1660_s30 = sshra.s32 %s457_s25, 4  ;;  %s1667_s21 = scalar_lea.hbm %s2184_s1, 16  ;;  %s1661_s30 = int_to_ptr.hbm [resolvable:$true] %s1660_s30 }
  0x46   : > { %s1662_s15 = scalar_lea.hbm %s1661_s30, 8  ;;  %p1668_p11 = scmp.lt.s32.totalorder %s1661_s30, %s2184_s1 }
  0x47   : > { %p1663_p5 = scmp.ne.s32.totalorder %s1661_s30, %s1662_s15  ;;  %p1669_p12 = scmp.lt.s32.totalorder %s1667_s21, %s1662_s15 }
  0x49   : > { %p1665_p8 = pnand %p1663_p5, %p1634_p9  ;;  %p1670_p2 = por %p1669_p12, %p1668_p11 }
  0x4b   : > { %p1666_p10 = pneg %p1665_p8 }
  0x4d   : > { %p1671_p4 = pnand %p1670_p2, %p1666_p10 }
  0x4f   : > { %1674 = shalt.err (!%p1671_p4)
}
  0x50   : > { %1380 = dma.hbm_to_vmem [thread:$0]  (!%p1977_p7), %s457_s25, 128, %s459_s2, %s447_s20  }
  0x51   : > { %467 = sbr.rel (%p1882_p3) target bundleno = 1308 (0x51c), region = 68  ;;  %s2018_s10 = sand.u32 (!%p1882_p3), 1, %s1764_s22  }
  0x52   : > { %s1290_s12 = sshll.u32 (!%p1882_p3), %s2018_s10, 4  ;;  %s470_s14 = scalar_lea.sflag (!%p1882_p3), [#allocation4], %s2018_s10 }
  0x53   : > { %s2024_s27 = scalar_lea.vmem (!%p1882_p3), [#allocation3], %s1290_s12 }
  0x56   : > { %1735 = dma.done.wait (%p1954_p13), %s470_s14, 256  }
  0x57   : > { %1737 = vsyncadd (%p1954_p13), %s470_s14, 4294967040  ;;  %s479_s29 = sand.u32 1, %s1877_s28   ;;  %s1291_s19 = sshll.u32 %s2018_s10, 3 }
  0x58   : > { %s480_s16 = scalar_lea.sflag [#allocation7], %s479_s29  ;;  %s483_s2 = scalar_lea.vmem [#allocation6], %s1291_s19 }
  0x59   : > { %1739 = dma.done.wait (%p1954_p13), %s480_s16, 128  }
  0x5a   : > { %1741 = vsyncadd (%p1954_p13), %s480_s16, 4294967168 }
  0x5b   : > { %1743 = dma.done.wait (%p54_p1), [#allocation7], 256  }
  0x5c   : > { %1745 = vsyncadd (%p54_p1), [#allocation7], 4294967040 }
  0x5d   : > { %1747 = dma.done.wait (%p54_p1), [#allocation10], 1024  }
  0x5e   : > { %1749 = vsyncadd (%p54_p1), [#allocation10], 4294966272 }
  0x5f   : > { %1751 = dma.done.wait (%p54_p1), [#allocation13], 1024  }
  0x60   : > { %1753 = vsyncadd (%p54_p1), [#allocation13], 4294966272  ;;  %v559_v0 = vld [vmem:[#allocation8 + $0x8] sm:$0xff]  ;;  %v558_v1 = vld [vmem:[#allocation8] sm:$0xff]  ;;  %vm564_vm0 = vcmask 130048   ;;  %vm596_vm1 = vcmask 261120  }
  0x61   : > { %582 = vmatpush.msra.mxu2 %v559_v0  ;;  %v557_v2 = vld [vmem:[%s483_s2] sm:$0xff]  ;;  %v591_v3 = vld [vmem:[#allocation9 + $0x18] sm:$0xff]  ;;  %v590_v4 = vld [vmem:[#allocation9 + $0x10] sm:$0xff]  ;;  %s1781_s20 = smov 120   ;;  %vm687_vm2 = vcmask 64512   ;;  %s1782_s21 = smov 104  }
  0x62   : > { %615 = vmatpush.msra.mxu1 %v591_v3  ;;  %v631_v5 = vld [vmem:[#allocation11 + $0x18] sm:$0xff]  ;;  %v589_v6 = vld [vmem:[#allocation9 + $0x8] sm:$0xff]  ;;  %v588_v7 = vld [vmem:[#allocation9] sm:$0xff]  ;;  %s1783_s23 = smov 112   ;;  %s1784_s18 = smov 8   ;;  %vm871_vm3 = vcmask 130112  }
  0x63   : > { %583 = vmatpush.msra.mxu2 %v558_v1  ;;  %v662_v8 = vld [vmem:[#allocation12 + $0x18] sm:$0xff]  ;;  %v630_v9 = vld [vmem:[#allocation11 + $0x10] sm:$0xff]  ;;  %v629_v13 = vld [vmem:[#allocation11 + $0x8] sm:$0xff]  ;;  %s1785_s14 = smov 24   ;;  %vm971_vm4 = vcmask 195712   ;;  %vm1071_vm5 = vcmask 261312  }
  0x64   : > { %1298 = vmatmul.msk.f32.vlgmr.msra.gmra.mxu2 %vm564_vm0, %v557_v2  ;;  %616 = vmatpush.msra.mxu1 %v590_v4  ;;  %v661_v10 = vld [vmem:[#allocation12 + $0x10] sm:$0xff]  ;;  %v2054_v12 = vld [vmem:[%s2024_s27 + $0x8] sm:$0xff]  ;;  %v628_v15 = vld [vmem:[#allocation11] sm:$0xff]  ;;  %s554_s16 = scalar_lea.vmem [#allocation15], %s1290_s12  ;;  %s1331_s2 = sshll.u32 %s1877_s28, 4 }
  0x65   : > { %651 = vmatpush.msrb.mxu2 %v631_v5  ;;  %679 = vmatpush.msra.mxu3 %v662_v8  ;;  %v2049_v11 = vld [vmem:[%s2024_s27] sm:$0xff]  ;;  %v660_v14 = vld [vmem:[#allocation12 + $0x8] sm:$0xff]  ;;  %s1786_s27 = smov 16   ;;  %s2229_s17 = sld [smem:[#allocation32_spill]] }
  0x66   : > { %617 = vmatpush.msra.mxu1 %v589_v6  ;;  %v659_v16 = vld [vmem:[#allocation12] sm:$0xff]  ;;  %v1444_v17 = vld [vmem:[%s2188_s5] ss:$0 sm:$0xff]  ;;  %s1118_s15 = scalar_lea.sflag [#allocation5], %s2018_s10 }
  0x67   : > { %652 = vmatpush.msrb.mxu2 %v630_v9  ;;  %680 = vmatpush.msra.mxu3 %v661_v10  ;;  %v1443_v18 = vld [vmem:[%s2186_s3] ss:$0 sm:$0xff] }
  0x68   : > { %618 = vmatpush.msra.mxu1 %v588_v7  ;;  %v1445_v26 = vld [vmem:[%s2190_s7] ss:$0 sm:$0xff] }
  0x69   : > { %1299 = vmatmul.msk.f32.vlgmr.msra.gmra.mxu1 %vm596_vm1, %v2049_v11  ;;  %653 = vmatpush.msrb.mxu2 %v629_v13  ;;  %v1446_v27 = vld [vmem:[%s2192_s9] ss:$0 sm:$0xff] }
  0x6a   : > { %681 = vmatpush.msra.mxu3 %v660_v14 }
  0x6b   : > { %654 = vmatpush.msrb.mxu2 %v628_v15  ;;  %s1129_s25 = scalar_lea.hbm %s2229_s17, %s1331_s2 }
  0x6c   : > { %682 = vmatpush.msra.mxu3 %v659_v16  ;;  %s1132_s30 = sshll.u32 %s1129_s25, 4  ;;  %s1133_s30 = int_to_ptr.hbm [resolvable:$true] %s1132_s30 }
  0x6d   : > { %s1704_s12 = sshra.s32 %s1133_s30, 4  ;;  %s1705_s12 = int_to_ptr.hbm [resolvable:$true] %s1704_s12 }
  0x6e   : > { %s1706_s4 = scalar_lea.hbm %s1705_s12, 16  ;;  %p1711_p7 = scmp.lt.s32.totalorder %s1705_s12, %s2229_s17 }
  0x6f   : > { %p1707_p1 = scmp.ne.s32.totalorder %s1705_s12, %s1706_s4 }
  0x71   : > { %1300 = vmatmul.msk.f32.gmra.mxu1 %vm596_vm1, %v2054_v12  ;;  %p1708_p3 = pnand %p1707_p1, %p1958_p0 }
  0x73   : > { %p1709_p13 = pneg %p1708_p3 }
  0xe6   : > { %v620_v19 = vpop.f32.mrf.mxu1 }
  0xe7   : > { %v585_v20 = vpop.f32.mrf.mxu2  ;;  %v621_v21 = vadd.f32 %v1444_v17, %v620_v19 }
  0xe8   : > { %v586_v22 = vadd.f32 %v1443_v18, %v585_v20 }
  0xe9   : > { %v626_v32 = vmul.f32 0.35355338, %v621_v21 }
  0xea   : > { %1301 = vmatmul.msk.f32.vlgmr.msrb.gmra.mxu2 %vm596_vm1, %v586_v22  ;;  %1302 = vmatmul.msk.f32.vlgmr.msra.gmra.mxu3 %vm596_vm1, %v586_v22 }
  0xee   : > { %v623_v23 = vpop.f32.mrf.mxu1 }
  0xef   : > { %v624_v24 = vadd.f32 %v1444_v17, %v623_v23 }
  0xf1   : > { %v627_v25 = vmul.f32 0.35355338, %v624_v24 }
  0xf3   : > { %775 = vrot.lane.b32.xlu1 %v627_v25, %s1781_s20 }
 0x165   : > { %v776_v33 = vpop.permute.xlu1 %775 }
 0x16d   : > { %v656_v28 = vpop.f32.mrf.mxu2  ;;  %v684_v29 = vpop.f32.mrf.mxu3 }
 0x16e   : > { %v657_v30 = vadd.f32 %v1445_v26, %v656_v28  ;;  %v2073_v31 = vadd.f32 %v1446_v27, %v684_v29 }
 0x170   : > { %763 = vmatpush.msra.mxu2 %v2073_v31  ;;  %978 = vrot.lane.b32.xlu2 %v657_v30, %s1782_s21 }
 0x171   : > { %777 = vrot.lane.b32.xlu0 %v657_v30, %s1781_s20  ;;  %1303 = vmatpush.xpose.msk.msra.mxu0 %vm687_vm2, %v657_v30 }
 0x172   : > { %878 = vrot.lane.b32.xlu1 %v657_v30, %s1783_s23 }
 0x174   : > { %1304 = vmatmul.msk.f32.vlgmr.msra.gmra.mxu0 %vm687_vm2, %v626_v32 }
 0x178   : > { %874 = vrot.lane.b32.xlu2 %v626_v32, %s1783_s23 }
 0x179   : > { %773 = vrot.lane.b32.xlu0 %v626_v32, %s1781_s20 }
 0x17a   : > { %876 = vrot.lane.b32.xlu1 %v627_v25, %s1783_s23 }
 0x17c   : > { %1305 = vmatmul.msk.f32.gmra.mxu0 %vm687_vm2, %v627_v25 }
 0x180   : > { %976 = vrot.lane.b32.xlu2 %v627_v25, %s1782_s21 }
 0x181   : > { %974 = vrot.lane.b32.xlu0 %v626_v32, %s1782_s21 }
 0x1ca   : > { %v979_v34 = vpop.permute.xlu2 %978 }
 0x1d2   : > { %v875_v37 = vpop.permute.xlu2 %874 }
 0x1da   : > { %v977_v45 = vpop.permute.xlu2 %976 }
 0x1e3   : > { %v778_v35 = vpop.permute.xlu0 %777 }
 0x1e4   : > { %v879_v36 = vpop.permute.xlu1 %878  ;;  %1308 = vmatpush.xpose.msk.msrb.mxu3 %vm687_vm2, %v778_v35 }
 0x1e5   : > { %1313 = vmatpush.xpose.msk.msrb.mxu0 %vm687_vm2, %v879_v36 }
 0x1e8   : > { %1318 = vmatpush.xpose.msk.msra.mxu3 %vm687_vm2, %v979_v34  ;;  %1314 = vmatmul.msk.f32.vlgmr.msrb.gmra.mxu0 %vm687_vm2, %v875_v37 }
 0x1eb   : > { %v774_v38 = vpop.permute.xlu0 %773 }
 0x1ec   : > { %1309 = vmatmul.msk.f32.vlgmr.msrb.gmra.mxu3 %vm687_vm2, %v774_v38  ;;  %v877_v39 = vpop.permute.xlu1 %876 }
 0x1f0   : > { %1315 = vmatmul.msk.f32.gmra.mxu0 %vm687_vm2, %v877_v39 }
 0x1f1   : > { %v714_v40 = vpop.f32.mrf.mxu0 }
 0x1f2   : > { %v720_v41 = vsel %vm687_vm2, %v714_v40, -inf }
 0x1f3   : > { %721 = vmax.xlane.f32.xlu0 %v720_v41  ;;  %v975_v44 = vpop.permute.xlu0 %974 }
 0x1f4   : > { %1310 = vmatmul.msk.f32.gmra.mxu3 %vm687_vm2, %v776_v33 }
 0x1f9   : > { %v717_v42 = vpop.f32.mrf.mxu0 }
 0x1fa   : > { %v723_v43 = vsel %vm687_vm2, %v717_v42, -inf }
 0x1fb   : > { %724 = vmax.xlane.f32.xlu2 %v723_v43 }
 0x1fc   : > { %1319 = vmatmul.msk.f32.vlgmr.msra.gmra.mxu3 %vm687_vm2, %v975_v44 }
 0x204   : > { %1320 = vmatmul.msk.f32.gmra.mxu3 %vm687_vm2, %v977_v45 }
 0x265   : > { %v903_v46 = vpop.f32.mrf.mxu0 }
 0x266   : > { %v909_v47 = vsel %vm687_vm2, %v903_v46, -inf  ;;  %v722_v52 = vpop.xlane.xlu0 %721 }
 0x267   : > { %910 = vmax.xlane.f32.xlu0 %v909_v47  ;;  %v726_v53 = vsub.f32 %v714_v40, %v722_v52 }
 0x269   : > { %v728_v56 = vmul.f32 1.442695, %v726_v53 }
 0x26b   : > { %1448 = vpow2.f32 %v728_v56 }
 0x26d   : > { %v906_v48 = vpop.f32.mrf.mxu0 }
 0x26e   : > { %v912_v49 = vsel %vm687_vm2, %v906_v48, -inf  ;;  %v725_v57 = vpop.xlane.xlu2 %724 }
 0x26f   : > { %913 = vmax.xlane.f32.xlu2 %v912_v49  ;;  %v802_v50 = vpop.f32.mrf.mxu3  ;;  %v727_v58 = vsub.f32 %v717_v42, %v725_v57 }
 0x270   : > { %v808_v51 = vsel %vm687_vm2, %v802_v50, -inf }
 0x271   : > { %809 = vmax.xlane.f32.xlu1 %v808_v51  ;;  %v730_v61 = vmul.f32 1.442695, %v727_v58  ;;  %v1449_v62 = vpop.eup %1448 }
 0x272   : > { %v732_v0 = vsel %vm687_vm2, %v1449_v62, 0.0 }
 0x273   : > { %1450 = vpow2.f32 %v730_v61 }
 0x277   : > { %v805_v54 = vpop.f32.mrf.mxu3 }
 0x278   : > { %v811_v55 = vsel %vm687_vm2, %v805_v54, -inf }
 0x279   : > { %812 = vmax.xlane.f32.xlu2 %v811_v55  ;;  %v1451_v2 = vpop.eup %1450 }
 0x27a   : > { %v735_v3 = vsel %vm687_vm2, %v1451_v2, 0.0 }
 0x27f   : > { %v1003_v59 = vpop.f32.mrf.mxu3 }
 0x280   : > { %v1009_v60 = vsel %vm687_vm2, %v1003_v59, -inf }
 0x281   : > { %1010 = vmax.xlane.f32.xlu1 %v1009_v60 }
 0x287   : > { %v1006_v63 = vpop.f32.mrf.mxu3 }
 0x288   : > { %v1012_v1 = vsel %vm687_vm2, %v1006_v63, -inf }
 0x289   : > { %733 = vadd.xlane.f32.xlu1 %v732_v0  ;;  %1013 = vmax.xlane.f32.xlu0 %v1012_v1 }
 0x291   : > { %831 = vrot.lane.b32.xlu2 %v2073_v31, %s1781_s20  ;;  %736 = vadd.xlane.f32.xlu0 %v735_v3  ;;  %s1130_s20 = sshll.u32 %s554_s16, 4  ;;  %s1131_s20 = int_to_ptr.vmem [resolvable:$true] %s1130_s20 }
 0x2da   : > { %v911_v4 = vpop.xlane.xlu0 %910 }
 0x2db   : > { %v915_v5 = vsub.f32 %v903_v46, %v911_v4 }
 0x2dd   : > { %v917_v6 = vmul.f32 1.442695, %v915_v5 }
 0x2df   : > { %1452 = vpow2.f32 %v917_v6 }
 0x2e2   : > { %v914_v7 = vpop.xlane.xlu2 %913 }
 0x2e3   : > { %v916_v8 = vsub.f32 %v906_v48, %v914_v7  ;;  %v1079_v7 = vld [vmem:[#allocation14 + $0x18] sm:$0xff] }
 0x2e4   : > { %v810_v9 = vpop.xlane.xlu1 %809  ;;  %1102 = vmatpush.msra.mxu0 %v1079_v7 }
 0x2e5   : > { %v2108_v10 = vpop.eup %1452  ;;  %v919_v13 = vmul.f32 1.442695, %v916_v8  ;;  %v814_v14 = vsub.f32 %v802_v50, %v810_v9  ;;  %v1078_v8 = vld [vmem:[#allocation14 + $0x10] sm:$0xff]  ;;  %v1077_v9 = vld [vmem:[#allocation14 + $0x8] sm:$0xff] }
 0x2e6   : > { %v921_v15 = vsel %vm687_vm2, %v2108_v10, 0.0  ;;  %1103 = vmatpush.msra.mxu0 %v1078_v8 }
 0x2e7   : > { %1454 = vpow2.f32 %v919_v13  ;;  %v816_v16 = vmul.f32 1.442695, %v814_v14  ;;  %922 = vadd.xlane.f32.xlu0 %v921_v15 }
 0x2e8   : > { %1104 = vmatpush.msra.mxu0 %v1077_v9 }
 0x2e9   : > { %1456 = vpow2.f32 %v816_v16 }
 0x2ec   : > { %v813_v17 = vpop.xlane.xlu2 %812 }
 0x2ed   : > { %v2112_v18 = vpop.eup %1454  ;;  %v815_v19 = vsub.f32 %v805_v54, %v813_v17 }
 0x2ee   : > { %v924_v20 = vsel %vm687_vm2, %v2112_v18, 0.0 }
 0x2ef   : > { %v1457_v21 = vpop.eup %1456  ;;  %v818_v22 = vmul.f32 1.442695, %v815_v19  ;;  %925 = vadd.xlane.f32.xlu0 %v924_v20 }
 0x2f0   : > { %v820_v23 = vsel %vm687_vm2, %v1457_v21, 0.0 }
 0x2f1   : > { %1458 = vpow2.f32 %v818_v22  ;;  %821 = vadd.xlane.f32.xlu2 %v820_v23 }
 0x2f4   : > { %v1011_v24 = vpop.xlane.xlu1 %1010  ;;  %v832_v25 = vpop.permute.xlu2 %831 }
 0x2f5   : > { %v1015_v26 = vsub.f32 %v1003_v59, %v1011_v24  ;;  %855 = vmatpush.msrb.mxu1 %v832_v25 }
 0x2f7   : > { %v1459_v27 = vpop.eup %1458  ;;  %v1017_v28 = vmul.f32 1.442695, %v1015_v26 }
 0x2f8   : > { %v823_v29 = vsel %vm687_vm2, %v1459_v27, 0.0 }
 0x2f9   : > { %1460 = vpow2.f32 %v1017_v28  ;;  %824 = vadd.xlane.f32.xlu1 %v823_v29 }
 0x2fc   : > { %v734_v30 = vpop.xlane.xlu1 %733  ;;  %v1014_v32 = vpop.xlane.xlu0 %1013 }
 0x2fd   : > { %1462 = vrcp.f32 %v734_v30  ;;  %v1016_v33 = vsub.f32 %v1006_v63, %v1014_v32 }
 0x2ff   : > { %v1461_v34 = vpop.eup %1460  ;;  %v1019_v35 = vmul.f32 1.442695, %v1016_v33 }
 0x300   : > { %v1021_v36 = vsel %vm687_vm2, %v1461_v34, 0.0 }
 0x301   : > { %1464 = vpow2.f32 %v1019_v35  ;;  %1022 = vadd.xlane.f32.xlu1 %v1021_v36 }
 0x303   : > { %v1463_v37 = vpop.eup %1462 }
 0x304   : > { %v740_v38 = vmul.f32 %v1463_v37, %v1449_v62  ;;  %v737_v39 = vpop.xlane.xlu0 %736 }
 0x305   : > { %1466 = vrcp.f32 %v737_v39 }
 0x306   : > { %1306 = vmatmul.msk.f32.vlgmr.msra.gmra.mxu2 %vm687_vm2, %v740_v38 }
 0x307   : > { %v1465_v40 = vpop.eup %1464 }
 0x308   : > { %v1024_v41 = vsel %vm687_vm2, %v1465_v40, 0.0 }
 0x309   : > { %1031 = vrot.lane.b32.xlu2 %v2073_v31, %s1782_s21  ;;  %1025 = vadd.xlane.f32.xlu0 %v1024_v41  ;;  %s1710_s21 = scalar_lea.hbm %s2229_s17, 32 }
 0x30a   : > { %p1712_p9 = scmp.lt.s32.totalorder %s1710_s21, %s1706_s4 }
 0x30b   : > { %v1467_v42 = vpop.eup %1466 }
 0x30c   : > { %v741_v43 = vmul.f32 %v1467_v42, %v1451_v2  ;;  %p1713_p5 = por %p1712_p9, %p1711_p7 }
 0x30e   : > { %1307 = vmatmul.msk.f32.gmra.mxu2 %vm687_vm2, %v741_v43  ;;  %p1714_p8 = pnand %p1713_p5, %p1709_p13 }
 0x31a   : > { %931 = vrot.lane.b32.xlu1 %v2073_v31, %s1783_s23 }
 0x35a   : > { %v923_v45 = vpop.xlane.xlu0 %922 }
 0x362   : > { %v926_v51 = vpop.xlane.xlu0 %925 }
 0x364   : > { %v822_v44 = vpop.xlane.xlu2 %821 }
 0x365   : > { %1468 = vrcp.f32 %v822_v44 }
 0x36b   : > { %v1469_v46 = vpop.eup %1468 }
 0x36c   : > { %v825_v47 = vpop.xlane.xlu1 %824  ;;  %v1032_v48 = vpop.permute.xlu2 %1031  ;;  %v828_v49 = vmul.f32 %v1469_v46, %v1457_v21  ;;  %v1447_v21 = vld [vmem:[%s2194_s11] ss:$0 sm:$0xff] }
 0x36d   : > { %1470 = vrcp.f32 %v825_v47  ;;  %1055 = vmatpush.msra.mxu1 %v1032_v48 }
 0x36e   : > { %1311 = vmatmul.msk.f32.vlgmr.msrb.gmra.mxu1 %vm687_vm2, %v828_v49 }
 0x373   : > { %v1471_v50 = vpop.eup %1470 }
 0x374   : > { %v1023_v52 = vpop.xlane.xlu1 %1022  ;;  %v829_v53 = vmul.f32 %v1471_v50, %v1459_v27 }
 0x375   : > { %1472 = vrcp.f32 %v1023_v52 }
 0x376   : > { %1312 = vmatmul.msk.f32.gmra.mxu1 %vm687_vm2, %v829_v53 }
 0x37b   : > { %v1473_v54 = vpop.eup %1472 }
 0x37c   : > { %v1029_v31 = vmul.f32 %v1473_v54, %v1461_v34  ;;  %v1026_v55 = vpop.xlane.xlu0 %1025 }
 0x37d   : > { %1474 = vrcp.f32 %v1026_v55 }
 0x37e   : > { %1321 = vmatmul.msk.f32.vlgmr.msra.gmra.mxu1 %vm687_vm2, %v1029_v31  ;;  %1476 = vrcp.f32 %v923_v45 }
 0x37f   : > { %1478 = vrcp.f32 %v926_v51 }
 0x383   : > { %v1475_v56 = vpop.eup %1474 }
 0x384   : > { %v1030_v57 = vmul.f32 %v1475_v56, %v1465_v40  ;;  %v1477_v58 = vpop.eup %1476 }
 0x385   : > { %v929_v60 = vmul.f32 %v1477_v58, %v2108_v10  ;;  %v1479_v62 = vpop.eup %1478  ;;  %v1076_v10 = vld [vmem:[#allocation14] sm:$0xff] }
 0x386   : > { %1322 = vmatmul.msk.f32.gmra.mxu1 %vm687_vm2, %v1030_v57  ;;  %v930_v0 = vmul.f32 %v1479_v62, %v2112_v18  ;;  %1105 = vmatpush.msra.mxu0 %v1076_v10 }
 0x389   : > { %v765_v59 = vpop.f32.mrf.mxu2 }
 0x38a   : > { %771 = vst.msk [vmem:[#allocation2] sm:$0xff] %vm687_vm2, %v765_v59 }
 0x38c   : > { %v932_v61 = vpop.permute.xlu1 %931 }
 0x38d   : > { %955 = vmatpush.msrb.mxu2 %v932_v61 }
 0x38e   : > { %1316 = vmatmul.msk.f32.vlgmr.msrb.gmra.mxu2 %vm687_vm2, %v929_v60 }
 0x391   : > { %v768_v63 = vpop.f32.mrf.mxu2 }
 0x392   : > { %772 = vst.msk [vmem:[#allocation2 + $0x8] sm:$0xff] %vm687_vm2, %v768_v63 }
 0x396   : > { %1317 = vmatmul.msk.f32.gmra.mxu2 %vm687_vm2, %v930_v0 }
 0x3eb   : > { %v857_v1 = vpop.f32.mrf.mxu1 }
 0x3ec   : > { %865 = vrot.lane.b32.xlu0 %v857_v1, %s1784_s18 }
 0x3f3   : > { %v860_v2 = vpop.f32.mrf.mxu1 }
 0x3fb   : > { %v1057_v3 = vpop.f32.mrf.mxu1 }
 0x3fc   : > { %1065 = vrot.lane.b32.xlu1 %v1057_v3, %s1785_s14 }
 0x403   : > { %v1060_v4 = vpop.f32.mrf.mxu1 }
 0x404   : > { %1067 = vrot.lane.b32.xlu0 %v1060_v4, %s1785_s14 }
 0x411   : > { %v957_v5 = vpop.f32.mrf.mxu2 }
 0x412   : > { %965 = vrot.lane.b32.xlu2 %v957_v5, %s1786_s27 }
 0x419   : > { %v960_v6 = vpop.f32.mrf.mxu2 }
 0x41a   : > { %867 = vrot.lane.b32.xlu2 %v860_v2, %s1784_s18  ;;  %967 = vrot.lane.b32.xlu1 %v960_v6, %s1786_s27 }
 0x45e   : > { %v866_v13 = vpop.permute.xlu0 %865 }
 0x45f   : > { %872 = vst.msk [vmem:[#allocation2] sm:$0xff] %vm871_vm3, %v866_v13 }
 0x46c   : > { %v966_v14 = vpop.permute.xlu2 %965 }
 0x46d   : > { %972 = vst.msk [vmem:[#allocation2] sm:$0xff] %vm971_vm4, %v966_v14 }
 0x46e   : > { %v1066_v15 = vpop.permute.xlu1 %1065 }
 0x46f   : > { %1072 = vst.msk [vmem:[#allocation2] sm:$0xff] %vm1071_vm5, %v1066_v15 }
 0x474   : > { %v868_v16 = vpop.permute.xlu2 %867 }
 0x475   : > { %873 = vst.msk [vmem:[#allocation2 + $0x8] sm:$0xff] %vm871_vm3, %v868_v16 }
 0x476   : > { %v1074_v17 = vld [vmem:[#allocation2] sm:$0xff]  ;;  %v1068_v19 = vpop.permute.xlu0 %1067 }
 0x477   : > { %1323 = vmatmul.msk.f32.vlgmr.msra.gmra.mxu0 %vm596_vm1, %v1074_v17 }
 0x48c   : > { %v968_v18 = vpop.permute.xlu1 %967 }
 0x48d   : > { %973 = vst.msk [vmem:[#allocation2 + $0x8] sm:$0xff] %vm971_vm4, %v968_v18 }
 0x48e   : > { %1073 = vst.msk [vmem:[#allocation2 + $0x8] sm:$0xff] %vm1071_vm5, %v1068_v19 }
 0x495   : > { %v1075_v20 = vld [vmem:[#allocation2 + $0x8] sm:$0xff] }
 0x496   : > { %1324 = vmatmul.msk.f32.gmra.mxu0 %vm596_vm1, %v1075_v20 }
 0x4f4   : > { %v1107_v22 = vpop.f32.mrf.mxu0 }
 0x4f5   : > { %v1108_v23 = vadd.f32 %v1447_v21, %v1107_v22 }
 0x4f7   : > { %v1113_v24 = vadd.f32 %v1108_v23, %v2049_v11 }
 0x4f9   : > { %1115 = vst.msk [vmem:[%s554_s16] sm:$0xff] %vm596_vm1, %v1113_v24 }
 0x513   : > { %v1110_v25 = vpop.f32.mrf.mxu0 }
 0x514   : > { %v1111_v26 = vadd.f32 %v1447_v21, %v1110_v25 }
 0x516   : > { %v1114_v27 = vadd.f32 %v1111_v26, %v2054_v12 }
 0x518   : > { %1116 = vst.msk [vmem:[%s554_s16 + $0x8] sm:$0xff] %vm596_vm1, %v1114_v27 }
 0x519   : > { %1717 = shalt.err (!%p1714_p8)
}
 0x51a   : > { %s1787_s10 = smov 128  }
 0x51b   : > { %1356 = dma.vmem_to_hbm [thread:$0]  (%p1958_p0), %s1131_s20, 256, %s1133_s30, %s1118_s15, %s1787_s10, %s1787_s10, %s1784_s18  }
 0x51c PF: > { %s2230_s27 = sld [smem:[#allocation22_spill]]  ;;  %p2232_p10 = scmp.ge.s32.totalorder %s1772_s24, 2 }
 0x51e   : > { %p1382_p11 = pnand %p2232_p10, %p1966_p6 }
 0x520   : > { %p1383_p12 = pneg %p1382_p11 }
 0x522   : > { %s1147_s19 = sand.u32 1, %s2230_s27  }
 0x523   : > { %s1148_s16 = scalar_lea.sflag [#allocation5], %s1147_s19 }
 0x524   : > { %1755 = dma.done.wait (%p1383_p12), %s1148_s16, 256  }
 0x525   : > { %1757 = vsyncadd (%p1383_p12), %s1148_s16, 4294967040  ;;  %s2233_s24 = sld [smem:[#allocation24_spill]]  ;;  %s2236_s21 = smov %s1764_s22 }
 0x526   : > { %s2234_s2 = sld [smem:[#allocation23_spill]] }
 0x527   : > { %s2235_s23 = sld [smem:[#allocation25_spill]] }
 0x52b   : > { %p30_p2 = scmp.ge.s32.totalorder %s2233_s24, 4  }
 0x52c   : > { %s2237_s22 = smov %s2234_s2 }
 0x52d   :  { %32 = sbr.rel (!%p30_p2) target bundleno = 16 (0x10), region = 146 }
 0x532   :  { %1154 = vsyncpa [#allocation4], 1 }
 0x533   :  { %1156 = vsyncpa [#allocation4 + $0x1], 1 }
 0x534   :  { %1157 = vsyncpa [#allocation7], 1 }
 0x535   :  { %1159 = vsyncpa [#allocation7 + $0x1], 1 }
 0x536   :  { %1160 = vsyncpa [#allocation10], 1 }
 0x537   :  { %1161 = vsyncpa [#allocation13], 1 }
 0x538   :  { %1162 = vsyncpa [#allocation5], 1 }
 0x539   :  { %1164 = vsyncpa [#allocation5 + $0x1], 1 }

</bundles_post_ra>
